<compile_context>
chip_gen: v5e
topology: v5e:2x2
jax: 0.10.0
libtpu: 0.0.40
codegen_flags: <defaults>
</compile_context>

<pallas_src>
import jax
import jax.numpy as jnp
from jax.experimental import pallas as pl
from jax.experimental.pallas import tpu as pltpu

_LANES = 128      # vreg lane width; pad the 2-wide output to a lane-dense slab.
_SUBLANES = 8     # sublane grain for the second-to-last dim.


def nsp_kernel(x_ref, w_ref, b_ref, o_ref):
    # One batch tile: (TB, H) @ (H, 128) on the MXU, f32 accumulation, bias add.
    acc = jnp.dot(x_ref[...], w_ref[...], preferred_element_type=jnp.float32)
    o_ref[...] = (acc + b_ref[...]).astype(o_ref.dtype)


def next_sentence_pred(x, w_torch, b_torch, *, tb_max=512, compute_dtype=None):
    """NextSentencePred forward: Y = X @ W^T + b.

    x:        (B, H)
    w_torch:  (C, H)  -- torch nn.Linear weight layout, C == 2
    b_torch:  (C,)
    returns:  (B, C) in x.dtype
    compute_dtype: optionally jnp.bfloat16 to halve HBM traffic (accumulation
                   stays f32 on the MXU). Default keeps the input dtype so the
                   forward matches nn.Linear exactly.
    """
    B, H = x.shape
    C, Hw = w_torch.shape
    assert H == Hw and C == 2

    out_dtype = x.dtype
    if compute_dtype is not None:
        x = x.astype(compute_dtype)
        w_torch = w_torch.astype(compute_dtype)

    # Lane-dense padding: W^T (H, 2) -> (H, 128), bias (2,) -> (1, 128); padding
    # columns are exact zeros so sliced-off lanes never carry garbage.
    w_pad = jnp.zeros((H, _LANES), dtype=x.dtype).at[:, :C].set(w_torch.T)
    b_pad = jnp.zeros((1, _LANES), dtype=jnp.float32).at[0, :C].set(
        b_torch.astype(jnp.float32))

    # Batch tiling: biggest tile up to tb_max, rows rounded to the 8-sublane grain.
    b_rounded = max(_SUBLANES, pl.cdiv(B, _SUBLANES) * _SUBLANES)
    tb = min(tb_max, b_rounded)
    n_tiles = pl.cdiv(b_rounded, tb)
    Bp = n_tiles * tb
    if Bp != B:
        x = jnp.pad(x, ((0, Bp - B), (0, 0)))

    itemsize = jnp.dtype(x.dtype).itemsize
    out_itemsize = jnp.dtype(out_dtype).itemsize
    # Double-buffered X tile + double-buffered 128-wide output tile
    # + resident padded W + resident bias, with 2x headroom.
    vmem_needed = (2 * tb * H * itemsize
                   + 2 * tb * _LANES * out_itemsize
                   + H * _LANES * itemsize
                   + _LANES * 4)
    vmem_limit = int(min(max(2 * vmem_needed, 4 << 20), 48 << 20))

    out_padded = pl.pallas_call(
        nsp_kernel,
        out_shape=jax.ShapeDtypeStruct((Bp, _LANES), out_dtype),
        grid_spec=pltpu.PrefetchScalarGridSpec(
            num_scalar_prefetch=0,
            grid=(n_tiles,),
            in_specs=[
                pl.BlockSpec((tb, H), lambda i: (i, 0)),      # X: tiled over batch
                pl.BlockSpec((H, _LANES), lambda i: (0, 0)),  # W: resident in VMEM
                pl.BlockSpec((1, _LANES), lambda i: (0, 0)),  # bias: resident in VMEM
            ],
            out_specs=pl.BlockSpec((tb, _LANES), lambda i: (i, 0)),
        ),
        compiler_params=pltpu.CompilerParams(
            dimension_semantics=("parallel",),  # independent batch tiles (2 TCs on v7x)
            vmem_limit_bytes=vmem_limit),
        cost_estimate=pl.CostEstimate(
            flops=2 * B * H * C,
            bytes_accessed=itemsize * (B * H + H * C) + 4 * B * C,
            transcendentals=0),
    )(x, w_pad, b_pad)

    return out_padded[:B, :C]


if __name__ == "__main__":
    # Small shapes implied by the module: batch=8, num_inputs(hidden)=32, out=2.
    B, H, C = 8, 32, 2
    key = jax.random.PRNGKey(0)
    kx, kw, kb = jax.random.split(key, 3)

    x = jax.random.normal(kx, (B, H), dtype=jnp.float32)
    # Deterministic synthetic parameters in torch nn.Linear layout: (2, H), (2,)
    w_torch = jax.random.normal(kw, (C, H), dtype=jnp.float32) * 0.02
    b_torch = jax.random.normal(kb, (C,), dtype=jnp.float32) * 0.02

    out = next_sentence_pred(x, w_torch, b_torch)
    out = jax.block_until_ready(out)

    # Pure-JAX reference (same semantics as torch nn.Linear forward).
    ref = x @ w_torch.T + b_torch[None, :]
    assert out.shape == (B, C)
    assert jnp.allclose(out, ref, atol=1e-5, rtol=1e-5)
    print("KERNEL_OK")
</pallas_src>

<mosaic_0001>
module attributes {stable_mosaic.version = 11 : i64} {
  func.func @nsp_kernel(%arg0: i32, %arg1: memref<8x32xf32, #tpu.memory_space<vmem>>, %arg2: memref<32x128xf32, #tpu.memory_space<vmem>>, %arg3: memref<1x128xf32, #tpu.memory_space<vmem>>, %arg4: memref<8x128xf32, #tpu.memory_space<vmem>>) attributes {dimension_semantics = [#tpu.dimension_semantics<parallel>], iteration_bounds = array<i64: 1>, scalar_prefetch = 0 : i64, scratch_operands = 0 : i64, tpu.core_type = #tpu.core_type<tc>, window_params = [{transform_indices = @transform_0, window_bounds = array<i64: 8, 32>}, {pipeline_mode = #tpu.pipeline_mode<synchronous>, transform_indices = @transform_1, window_bounds = array<i64: 32, 128>}, {pipeline_mode = #tpu.pipeline_mode<synchronous>, transform_indices = @transform_2, window_bounds = array<i64: 1, 128>}, {transform_indices = @transform_3, window_bounds = array<i64: 8, 128>}]} {
    %c0 = arith.constant 0 : index
    %c0_0 = arith.constant 0 : index
    %0 = vector.load %arg1[%c0, %c0_0] : memref<8x32xf32, #tpu.memory_space<vmem>>, vector<8x32xf32>
    %c0_1 = arith.constant 0 : index
    %c0_2 = arith.constant 0 : index
    %1 = vector.load %arg2[%c0_1, %c0_2] : memref<32x128xf32, #tpu.memory_space<vmem>>, vector<32x128xf32>
    %cst = arith.constant dense<0.000000e+00> : vector<8x128xf32>
    %2 = tpu.matmul %0, %1, %cst {dimension_numbers = #tpu.dot_dimension_numbers<[1], [0], [0], [1], [0, 0, 1, 1], [], []>} : vector<8x32xf32>, vector<32x128xf32>, vector<8x128xf32> -> vector<8x128xf32>
    %c0_3 = arith.constant 0 : index
    %c0_4 = arith.constant 0 : index
    %3 = vector.load %arg3[%c0_3, %c0_4] : memref<1x128xf32, #tpu.memory_space<vmem>>, vector<1x128xf32>
    %4 = vector.broadcast %3 : vector<1x128xf32> to vector<8x128xf32>
    %5 = arith.addf %2, %4 : vector<8x128xf32>
    %c0_5 = arith.constant 0 : index
    %c0_6 = arith.constant 0 : index
    %6 = vector.load %arg4[%c0_5, %c0_6] : memref<8x128xf32, #tpu.memory_space<vmem>>, vector<8x128xf32>
    tpu.vector_store %arg4[%c0_5, %c0_6], %5 {strides = array<i32>} : memref<8x128xf32, #tpu.memory_space<vmem>>, vector<8x128xf32>,
    return
  }
  func.func @transform_0(%arg0: i32) -> (i32, i32) {
    %c0_i32 = arith.constant 0 : i32
    %c0_i32_0 = arith.constant 0 : i32
    return %arg0, %c0_i32 : i32, i32
  }
  func.func @transform_1(%arg0: i32) -> (i32, i32) {
    %c0_i32 = arith.constant 0 : i32
    %c0_i32_0 = arith.constant 0 : i32
    %c0_i32_1 = arith.constant 0 : i32
    return %c0_i32, %c0_i32_0 : i32, i32
  }
  func.func @transform_2(%arg0: i32) -> (i32, i32) {
    %c0_i32 = arith.constant 0 : i32
    %c0_i32_0 = arith.constant 0 : i32
    %c0_i32_1 = arith.constant 0 : i32
    return %c0_i32, %c0_i32_0 : i32, i32
  }
  func.func @transform_3(%arg0: i32) -> (i32, i32) {
    %c0_i32 = arith.constant 0 : i32
    %c0_i32_0 = arith.constant 0 : i32
    return %arg0, %c0_i32 : i32, i32
  }
}

</mosaic_0001>

<bundles_post_ra>
// kernel: tpu_custom_call.1
= control target key start
LH: loop header
LB: loop body
LE: loop exit
PB: predicated region body
PF: predicated region fallthrough
CT: control target
= control target key end

     0   :  { %8 = vsyncpa [#allocation3], 0  ;;  %s219_s0 = inlined_call_operand.hbm [shape: f32[8,32], index: 0, kind: input, shape index: {}]   ;;  %s220_s1 = inlined_call_operand.hbm [shape: f32[32,128], index: 1, kind: input, shape index: {}]   ;;  %s221_s2 = inlined_call_operand.vmem [shape: f32[1,128], index: 2, kind: input, shape index: {}]   ;;  %s222_s3 = inlined_call_operand.hbm [shape: f32[8,128], index: 3, kind: output, shape index: {}]  }
   0x1   :  { %9 = vsyncpa [#allocation6], 0 }
   0x2   :  { %10 = vsyncpa [#allocation4], 0  ;;  %s16_s14 = sshll.u32 %s219_s0, 4  ;;  %s182_s15 = smov [#allocation2]   ;;  %s17_s14 = int_to_ptr.hbm [resolvable:$true] %s16_s14 }
   0x3   :  { %s18_s16 = sshll.u32 %s182_s15, 4  ;;  %s26_s19 = sshll.u32 %s220_s1, 4  ;;  %s19_s16 = int_to_ptr.vmem [resolvable:$true] %s18_s16  ;;  %s27_s19 = int_to_ptr.hbm [resolvable:$true] %s26_s19 }
   0x4   :  { %21 = dma.hbm_to_vmem [thread:$0]  %s17_s14, 128, %s19_s16, [#allocation3]  }
   0x5   :  { %s183_s20 = smov [#allocation5]   ;;  %s184_s22 = smov 128  }
   0x6   :  { %s28_s21 = sshll.u32 %s183_s20, 4  ;;  %s185_s23 = smov 8   ;;  %s29_s21 = int_to_ptr.vmem [resolvable:$true] %s28_s21 }
   0x7   :  { %34 = dma.hbm_to_vmem [thread:$0]  %s27_s19, 512, %s29_s21, [#allocation6], %s184_s22, %s184_s22, %s185_s23  }
   0x8   :  { %176 = dma.done.wait [#allocation3], 128  }
   0x9   :  { %177 = vsyncadd [#allocation3], 4294967168 }
   0xa   :  { %178 = dma.done.wait [#allocation6], 512  }
   0xb   :  { %179 = vsyncadd [#allocation6], 4294966784  ;;  %v49_v0 = vld [vmem:[#allocation5 + $0x18] sm:$0xff]  ;;  %v48_v1 = vld [vmem:[#allocation5 + $0x10] sm:$0xff]  ;;  %vm54_vm0 = vcmask 261120   ;;  %s186_s24 = smov [#allocation7]  }
   0xc   :  { %70 = vmatpush.msra.mxu0 %v49_v0  ;;  %v47_v2 = vld [vmem:[#allocation5 + $0x8] sm:$0xff]  ;;  %v46_v3 = vld [vmem:[#allocation5] sm:$0xff]  ;;  %v45_v4 = vld [vmem:[#allocation2] sm:$0xff]  ;;  %s84_s25 = sshll.u32 %s186_s24, 4  ;;  %s86_s28 = sshll.u32 %s222_s3, 4  ;;  %s85_s25 = int_to_ptr.vmem [resolvable:$true] %s84_s25  ;;  %s87_s28 = int_to_ptr.hbm [resolvable:$true] %s86_s28 }
   0xd   :  { %v103_v5 = vld [vmem:[%s221_s2] ss:$0 sm:$0xff] }
   0xe   :  { %71 = vmatpush.msra.mxu0 %v48_v1 }
  0x10   :  { %72 = vmatpush.msra.mxu0 %v47_v2 }
  0x12   :  { %73 = vmatpush.msra.mxu0 %v46_v3 }
  0x13   :  { %97 = vmatmul.msk.f32.vlgmr.msra.gmra.mxu0 %vm54_vm0, %v45_v4 }
  0x90   :  { %v75_v6 = vpop.f32.mrf.mxu0 }
  0x91   :  { %v76_v7 = vadd.f32 %v103_v5, %v75_v6 }
  0x93   :  { %78 = vst [vmem:[#allocation7] sm:$0xff] %v76_v7 }
  0x94   :  { %89 = dma.vmem_to_hbm [thread:$0]  %s85_s25, 128, %s87_s28, [#allocation4]  }
  0x95   :  { %180 = dma.done.wait [#allocation4], 128  }
  0x96   :  { %181 = vsyncadd [#allocation4], 4294967168 }
  0x97   :  { %94 = vsyncpa [#allocation3], 1 }
  0x98   :  { %95 = vsyncpa [#allocation6], 1 }
  0x99   :  { %96 = vsyncpa [#allocation4], 1 }

</bundles_post_ra>
